<compile_context>
chip_gen: v7x
topology: tpu7x:2x2x1
jax: 0.10.0
libtpu: 0.0.40
codegen_flags: <defaults>
</compile_context>

<pallas_src>
import jax
import jax.numpy as jnp
from jax.experimental import pallas as pl
from jax.experimental.pallas import tpu as pltpu

D_MODEL = 128          # module default d_model
NUM_LAYERS = 3         # module default num_layers


def _make_stack_kernel(num_layers):
    def stack_kernel(x_ref, wt_ref, b_ref, alpha_ref, out_ref):
        # x_ref:     (TILE_N, D)        VMEM   row tile of the input
        # wt_ref:    (L, D, D)          VMEM   pre-transposed weights (wt[l] = W[l].T)
        # b_ref:     (L, 1, D)          VMEM
        # alpha_ref: (L,)               SMEM   PReLU slope (single scalar per layer)
        # out_ref:   (2L, TILE_N, D)    VMEM   out[2l] = linear out, out[2l+1] = prelu out
        h = x_ref[...]
        for l in range(num_layers):      # static unrolled loop; layers are sequential
            y = jnp.dot(h, wt_ref[l], preferred_element_type=jnp.float32) + b_ref[l]
            out_ref[2 * l, :, :] = y
            a = alpha_ref[l]
            z = jnp.where(y > 0, y, a * y)        # PReLU
            out_ref[2 * l + 1, :, :] = z
            h = z
    return stack_kernel


def multi_layer_transformer(x, wts, bs, alphas, *, tile_n=2048):
    """x: (B, S, D) float32.

    wts: (L, D, D) pre-transposed weights (wts[l] = W[l].T, torch W is (out,in)).
    bs:  (L, 1, D) biases.  alphas: (L,) PReLU slopes.

    Returns a single stacked array of shape (2*L, B, S, D):
      out[2l]   = output of layer l's Linear
      out[2l+1] = output of layer l's PReLU
    """
    B, S, D = x.shape
    L = wts.shape[0]
    N = B * S

    # Row tile: multiple of 8 (f32 sublane). Cap so the grid has >= 2 steps
    # whenever N > 8 (v7x megacore sharding over the "parallel" row axis).
    half = ((pl.cdiv(N, 2) + 7) // 8) * 8
    tile_n = min(tile_n, half)
    tile_n = max(8, (tile_n // 8) * 8)

    grid = (pl.cdiv(N, tile_n),)          # non-divisible grid; ragged last block masked
    x2 = x.reshape(N, D)                  # free reshape, no copy

    cost = pl.CostEstimate(
        flops=2 * L * N * D * D,
        transcendentals=0,
        bytes_accessed=(1 + 2 * L) * N * D * 4 + L * (D * D + D) * 4,
    )

    out = pl.pallas_call(
        _make_stack_kernel(L),
        out_shape=jax.ShapeDtypeStruct((2 * L, N, D), jnp.float32),
        grid=grid,
        in_specs=[
            # row tile of x, streamed per grid step (double-buffered)
            pl.BlockSpec((tile_n, D), lambda i: (i, 0)),
            # weights & biases: constant index_map -> VMEM-resident across grid
            pl.BlockSpec((L, D, D), lambda i: (0, 0, 0)),
            pl.BlockSpec((L, 1, D), lambda i: (0, 0, 0)),
            # per-layer PReLU scalars live in SMEM
            pl.BlockSpec(memory_space=pltpu.MemorySpace.SMEM),
        ],
        out_specs=pl.BlockSpec((2 * L, tile_n, D), lambda i: (0, i, 0)),
        compiler_params=pltpu.CompilerParams(
            # row tiles are independent -> shard across v7x's 2 TensorCores
            dimension_semantics=("parallel",),
            # headroom below v7x's 64 MiB/TC; lifts the 16/32 MiB default
            # scoped limit on v5e/v6e for tile_n = 1024-2048
            vmem_limit_bytes=48 * 1024 * 1024,
        ),
        cost_estimate=cost,
    )(x2, wts, bs, alphas)

    # No padded rows to drop; just restore (2L, B, S, D).
    return out.reshape(2 * L, B, S, D)


if __name__ == "__main__":
    key = jax.random.PRNGKey(0)
    kx, kw, kb = jax.random.split(key, 3)

    # Small shapes; S=9 makes N=18 non-divisible by the tile so the ragged
    # last-block path is exercised (tile_n clamps to 16 -> grid=(2,)).
    B, S = 2, 9
    x = jax.random.normal(kx, (B, S, D_MODEL), jnp.float32)

    # Deterministic parameter init matching PyTorch defaults:
    #   nn.Linear: U(-1/sqrt(in), 1/sqrt(in)) for weight and bias
    #   nn.PReLU:  alpha = 0.25 (single parameter)
    bound = 1.0 / (D_MODEL ** 0.5)
    wkeys = jax.random.split(kw, NUM_LAYERS)
    bkeys = jax.random.split(kb, NUM_LAYERS)
    Ws = jnp.stack([
        jax.random.uniform(wkeys[l], (D_MODEL, D_MODEL), jnp.float32, -bound, bound)
        for l in range(NUM_LAYERS)
    ])                                             # (L, out, in) like torch
    bs = jnp.stack([
        jax.random.uniform(bkeys[l], (1, D_MODEL), jnp.float32, -bound, bound)
        for l in range(NUM_LAYERS)
    ])                                             # (L, 1, D)
    alphas = jnp.full((NUM_LAYERS,), 0.25, jnp.float32)

    wts = jnp.transpose(Ws, (0, 2, 1))             # pre-transpose so y = h @ wt[l]

    out = multi_layer_transformer(x, wts, bs, alphas)
    jax.block_until_ready(out)

    # Pure-JAX reference check of the per-layer outputs.
    h = x
    for l in range(NUM_LAYERS):
        y_ref = h @ Ws[l].T + bs[l][0]
        z_ref = jnp.where(y_ref > 0, y_ref, 0.25 * y_ref)
        assert jnp.allclose(out[2 * l], y_ref, atol=1e-4, rtol=1e-4)
        assert jnp.allclose(out[2 * l + 1], z_ref, atol=1e-4, rtol=1e-4)
        h = z_ref

    print("KERNEL_OK")
</pallas_src>

<mosaic_0001>
module attributes {stable_mosaic.version = 11 : i64} {
  func.func @stack_kernel(%arg0: i32, %arg1: memref<16x128xf32, #tpu.memory_space<vmem>>, %arg2: memref<3x128x128xf32, #tpu.memory_space<vmem>>, %arg3: memref<3x1x128xf32, #tpu.memory_space<vmem>>, %arg4: memref<3xf32, #tpu.memory_space<smem>>, %arg5: memref<6x16x128xf32, #tpu.memory_space<vmem>>) attributes {dimension_semantics = [#tpu.dimension_semantics<parallel>], iteration_bounds = array<i64: 2>, scalar_prefetch = 0 : i64, scratch_operands = 0 : i64, tpu.core_type = #tpu.core_type<tc>, window_params = [{transform_indices = @transform_0, window_bounds = array<i64: 16, 128>}, {pipeline_mode = #tpu.pipeline_mode<synchronous>, transform_indices = @transform_1, window_bounds = array<i64: 3, 128, 128>}, {pipeline_mode = #tpu.pipeline_mode<synchronous>, transform_indices = @transform_2, window_bounds = array<i64: 3, 1, 128>}, {transform_indices = @transform_3, window_bounds = array<i64: 3>}, {transform_indices = @transform_4, window_bounds = array<i64: 6, 16, 128>}]} {
    %c0 = arith.constant 0 : index
    %c0_0 = arith.constant 0 : index
    %0 = vector.load %arg1[%c0, %c0_0] : memref<16x128xf32, #tpu.memory_space<vmem>>, vector<16x128xf32>
    %c0_1 = arith.constant 0 : index
    %c0_2 = arith.constant 0 : index
    %c0_3 = arith.constant 0 : index
    %1 = vector.load %arg2[%c0_1, %c0_2, %c0_3] : memref<3x128x128xf32, #tpu.memory_space<vmem>>, vector<1x128x128xf32>
    %2 = vector.shape_cast %1 : vector<1x128x128xf32> to vector<128x128xf32>
    %cst = arith.constant dense<0.000000e+00> : vector<16x128xf32>
    %3 = tpu.matmul %0, %2, %cst {dimension_numbers = #tpu.dot_dimension_numbers<[1], [0], [0], [1], [0, 0, 1, 1], [], []>} : vector<16x128xf32>, vector<128x128xf32>, vector<16x128xf32> -> vector<16x128xf32>
    %c0_4 = arith.constant 0 : index
    %c0_5 = arith.constant 0 : index
    %c0_6 = arith.constant 0 : index
    %4 = vector.load %arg3[%c0_4, %c0_5, %c0_6] : memref<3x1x128xf32, #tpu.memory_space<vmem>>, vector<1x1x128xf32>
    %5 = vector.shape_cast %4 : vector<1x1x128xf32> to vector<1x128xf32>
    %6 = vector.broadcast %5 : vector<1x128xf32> to vector<16x128xf32>
    %7 = arith.addf %3, %6 : vector<16x128xf32>
    %c0_7 = arith.constant 0 : index
    %c0_8 = arith.constant 0 : index
    %c0_9 = arith.constant 0 : index
    %8 = vector.load %arg5[%c0_7, %c0_8, %c0_9] : memref<6x16x128xf32, #tpu.memory_space<vmem>>, vector<1x16x128xf32>
    %9 = vector.shape_cast %8 : vector<1x16x128xf32> to vector<16x128xf32>
    %10 = vector.shape_cast %7 : vector<16x128xf32> to vector<1x16x128xf32>
    tpu.vector_store %arg5[%c0_7, %c0_8, %c0_9], %10 {strides = array<i32>} : memref<6x16x128xf32, #tpu.memory_space<vmem>>, vector<1x16x128xf32>,
    %c0_10 = arith.constant 0 : index
    %11 = memref.load %arg4[%c0_10] : memref<3xf32, #tpu.memory_space<smem>>
    %cst_11 = arith.constant 0.000000e+00 : f32
    %12 = vector.broadcast %cst_11 : f32 to vector<16x128xf32>
    %13 = arith.cmpf ogt, %7, %12 : vector<16x128xf32>
    %14 = vector.broadcast %11 : f32 to vector<16x128xf32>
    %15 = arith.mulf %14, %7 : vector<16x128xf32>
    %16 = arith.select %13, %7, %15 : vector<16x128xi1>, vector<16x128xf32>
    %c1 = arith.constant 1 : index
    %c0_12 = arith.constant 0 : index
    %c0_13 = arith.constant 0 : index
    %17 = vector.load %arg5[%c1, %c0_12, %c0_13] : memref<6x16x128xf32, #tpu.memory_space<vmem>>, vector<1x16x128xf32>
    %18 = vector.shape_cast %17 : vector<1x16x128xf32> to vector<16x128xf32>
    %19 = vector.shape_cast %16 : vector<16x128xf32> to vector<1x16x128xf32>
    tpu.vector_store %arg5[%c1, %c0_12, %c0_13], %19 {strides = array<i32>} : memref<6x16x128xf32, #tpu.memory_space<vmem>>, vector<1x16x128xf32>,
    %c1_14 = arith.constant 1 : index
    %c0_15 = arith.constant 0 : index
    %c0_16 = arith.constant 0 : index
    %20 = vector.load %arg2[%c1_14, %c0_15, %c0_16] : memref<3x128x128xf32, #tpu.memory_space<vmem>>, vector<1x128x128xf32>
    %21 = vector.shape_cast %20 : vector<1x128x128xf32> to vector<128x128xf32>
    %cst_17 = arith.constant dense<0.000000e+00> : vector<16x128xf32>
    %22 = tpu.matmul %16, %21, %cst_17 {dimension_numbers = #tpu.dot_dimension_numbers<[1], [0], [0], [1], [0, 0, 1, 1], [], []>} : vector<16x128xf32>, vector<128x128xf32>, vector<16x128xf32> -> vector<16x128xf32>
    %c1_18 = arith.constant 1 : index
    %c0_19 = arith.constant 0 : index
    %c0_20 = arith.constant 0 : index
    %23 = vector.load %arg3[%c1_18, %c0_19, %c0_20] : memref<3x1x128xf32, #tpu.memory_space<vmem>>, vector<1x1x128xf32>
    %24 = vector.shape_cast %23 : vector<1x1x128xf32> to vector<1x128xf32>
    %25 = vector.broadcast %24 : vector<1x128xf32> to vector<16x128xf32>
    %26 = arith.addf %22, %25 : vector<16x128xf32>
    %c2 = arith.constant 2 : index
    %c0_21 = arith.constant 0 : index
    %c0_22 = arith.constant 0 : index
    %27 = vector.load %arg5[%c2, %c0_21, %c0_22] : memref<6x16x128xf32, #tpu.memory_space<vmem>>, vector<1x16x128xf32>
    %28 = vector.shape_cast %27 : vector<1x16x128xf32> to vector<16x128xf32>
    %29 = vector.shape_cast %26 : vector<16x128xf32> to vector<1x16x128xf32>
    tpu.vector_store %arg5[%c2, %c0_21, %c0_22], %29 {strides = array<i32>} : memref<6x16x128xf32, #tpu.memory_space<vmem>>, vector<1x16x128xf32>,
    %c1_23 = arith.constant 1 : index
    %30 = memref.load %arg4[%c1_23] : memref<3xf32, #tpu.memory_space<smem>>
    %cst_24 = arith.constant 0.000000e+00 : f32
    %31 = vector.broadcast %cst_24 : f32 to vector<16x128xf32>
    %32 = arith.cmpf ogt, %26, %31 : vector<16x128xf32>
    %33 = vector.broadcast %30 : f32 to vector<16x128xf32>
    %34 = arith.mulf %33, %26 : vector<16x128xf32>
    %35 = arith.select %32, %26, %34 : vector<16x128xi1>, vector<16x128xf32>
    %c3 = arith.constant 3 : index
    %c0_25 = arith.constant 0 : index
    %c0_26 = arith.constant 0 : index
    %36 = vector.load %arg5[%c3, %c0_25, %c0_26] : memref<6x16x128xf32, #tpu.memory_space<vmem>>, vector<1x16x128xf32>
    %37 = vector.shape_cast %36 : vector<1x16x128xf32> to vector<16x128xf32>
    %38 = vector.shape_cast %35 : vector<16x128xf32> to vector<1x16x128xf32>
    tpu.vector_store %arg5[%c3, %c0_25, %c0_26], %38 {strides = array<i32>} : memref<6x16x128xf32, #tpu.memory_space<vmem>>, vector<1x16x128xf32>,
    %c2_27 = arith.constant 2 : index
    %c0_28 = arith.constant 0 : index
    %c0_29 = arith.constant 0 : index
    %39 = vector.load %arg2[%c2_27, %c0_28, %c0_29] : memref<3x128x128xf32, #tpu.memory_space<vmem>>, vector<1x128x128xf32>
    %40 = vector.shape_cast %39 : vector<1x128x128xf32> to vector<128x128xf32>
    %cst_30 = arith.constant dense<0.000000e+00> : vector<16x128xf32>
    %41 = tpu.matmul %35, %40, %cst_30 {dimension_numbers = #tpu.dot_dimension_numbers<[1], [0], [0], [1], [0, 0, 1, 1], [], []>} : vector<16x128xf32>, vector<128x128xf32>, vector<16x128xf32> -> vector<16x128xf32>
    %c2_31 = arith.constant 2 : index
    %c0_32 = arith.constant 0 : index
    %c0_33 = arith.constant 0 : index
    %42 = vector.load %arg3[%c2_31, %c0_32, %c0_33] : memref<3x1x128xf32, #tpu.memory_space<vmem>>, vector<1x1x128xf32>
    %43 = vector.shape_cast %42 : vector<1x1x128xf32> to vector<1x128xf32>
    %44 = vector.broadcast %43 : vector<1x128xf32> to vector<16x128xf32>
    %45 = arith.addf %41, %44 : vector<16x128xf32>
    %c4 = arith.constant 4 : index
    %c0_34 = arith.constant 0 : index
    %c0_35 = arith.constant 0 : index
    %46 = vector.load %arg5[%c4, %c0_34, %c0_35] : memref<6x16x128xf32, #tpu.memory_space<vmem>>, vector<1x16x128xf32>
    %47 = vector.shape_cast %46 : vector<1x16x128xf32> to vector<16x128xf32>
    %48 = vector.shape_cast %45 : vector<16x128xf32> to vector<1x16x128xf32>
    tpu.vector_store %arg5[%c4, %c0_34, %c0_35], %48 {strides = array<i32>} : memref<6x16x128xf32, #tpu.memory_space<vmem>>, vector<1x16x128xf32>,
    %c2_36 = arith.constant 2 : index
    %49 = memref.load %arg4[%c2_36] : memref<3xf32, #tpu.memory_space<smem>>
    %cst_37 = arith.constant 0.000000e+00 : f32
    %50 = vector.broadcast %cst_37 : f32 to vector<16x128xf32>
    %51 = arith.cmpf ogt, %45, %50 : vector<16x128xf32>
    %52 = vector.broadcast %49 : f32 to vector<16x128xf32>
    %53 = arith.mulf %52, %45 : vector<16x128xf32>
    %54 = arith.select %51, %45, %53 : vector<16x128xi1>, vector<16x128xf32>
    %c5 = arith.constant 5 : index
    %c0_38 = arith.constant 0 : index
    %c0_39 = arith.constant 0 : index
    %55 = vector.load %arg5[%c5, %c0_38, %c0_39] : memref<6x16x128xf32, #tpu.memory_space<vmem>>, vector<1x16x128xf32>
    %56 = vector.shape_cast %55 : vector<1x16x128xf32> to vector<16x128xf32>
    %57 = vector.shape_cast %54 : vector<16x128xf32> to vector<1x16x128xf32>
    tpu.vector_store %arg5[%c5, %c0_38, %c0_39], %57 {strides = array<i32>} : memref<6x16x128xf32, #tpu.memory_space<vmem>>, vector<1x16x128xf32>,
    return
  }
  func.func @transform_0(%arg0: i32) -> (i32, i32) {
    %c0_i32 = arith.constant 0 : i32
    %c0_i32_0 = arith.constant 0 : i32
    return %arg0, %c0_i32 : i32, i32
  }
  func.func @transform_1(%arg0: i32) -> (i32, i32, i32) {
    %c0_i32 = arith.constant 0 : i32
    %c0_i32_0 = arith.constant 0 : i32
    %c0_i32_1 = arith.constant 0 : i32
    %c0_i32_2 = arith.constant 0 : i32
    return %c0_i32, %c0_i32_0, %c0_i32_1 : i32, i32, i32
  }
  func.func @transform_2(%arg0: i32) -> (i32, i32, i32) {
    %c0_i32 = arith.constant 0 : i32
    %c0_i32_0 = arith.constant 0 : i32
    %c0_i32_1 = arith.constant 0 : i32
    %c0_i32_2 = arith.constant 0 : i32
    return %c0_i32, %c0_i32_0, %c0_i32_1 : i32, i32, i32
  }
  func.func @transform_3(%arg0: i32) -> i32 {
    %c0_i32 = arith.constant 0 : i32
    %c0_i32_0 = arith.constant 0 : i32
    return %c0_i32 : i32
  }
  func.func @transform_4(%arg0: i32) -> (i32, i32, i32) {
    %c0_i32 = arith.constant 0 : i32
    %c0_i32_0 = arith.constant 0 : i32
    %c0_i32_1 = arith.constant 0 : i32
    return %c0_i32, %arg0, %c0_i32_0 : i32, i32, i32
  }
}

</mosaic_0001>

<bundles_post_ra>
// kernel: tpu_custom_call.1
= control target key start
LH: loop header
LB: loop body
LE: loop exit
PB: predicated region body
PF: predicated region fallthrough
CT: control target
= control target key end

     0   :  { %9 = vsyncpa [#allocation3], 0  ;;  %s1508_s0 = inlined_call_operand.hbm [shape: f32[18,128], index: 0, kind: input, shape index: {}]   ;;  %s1509_s1 = inlined_call_operand.hbm [shape: f32[3,128,128], index: 1, kind: input, shape index: {}]   ;;  %s1510_s2 = inlined_call_operand.vmem [shape: f32[3,1,128], index: 2, kind: input, shape index: {}]   ;;  %s1511_s3 = inlined_call_operand.vmem [shape: f32[3], index: 3, kind: input, shape index: {}]   ;;  %s1512_s4 = inlined_call_operand.hbm [shape: f32[6,18,128], index: 4, kind: output, shape index: {}]  }
   0x1   :  { %11 = vsyncpa [#allocation3 + $0x1], 0 }
   0x2   :  { %12 = vsyncpa [#allocation7], 0 }
   0x3   :  { %13 = vsyncpa [#allocation5], 0 }
   0x4   :  { %14 = vsyncpa [#allocation4], 0 }
   0x5   :  { %16 = vsyncpa [#allocation4 + $0x1], 0  ;;  %s1273_s15 = smov 0   ;;  %s1275_s16 = smov 0  }
   0x6   :  { %s1277_s17 = smov 0   ;;  %s1279_s18 = smov 0  }
   0x7 LB: > { %s1294_s19 = sadd.s32 4294967295, %s1233_s18   ;;  %s747_s20 = sadd.s32 4294967294, %s1233_s18   ;;  %s1233_s18 = sphi %s1279_s18, %s1534_s18   ;;  %s1229_s17 = sphi %s1277_s17, %s1533_s17   ;;  %s1225_s16 = sphi %s1275_s16, %s1532_s16   ;;  %s1221_s15 = sphi %s1273_s15, %s1531_s15  }
   0x8   : > { %s1298_s21 = sadd.s32 1, %s1233_s18   ;;  %s29_s22 = sadd.s32 1, %s1229_s17 }
   0x9   : > { %s26_s23 = ssub.s32 %s1233_s18, %s1298_s21  ;;  %p36_p0 = scmp.ne.s32.totalorder %s1229_s17, %s1225_s16 }
   0xa   : > { %p27_p1 = scmp.eq.s32.totalorder %s26_s23, 0  ;;  %p37_p2 = scmp.eq.s32.totalorder %s1233_s18, 0 }
   0xb   : > { %p42_p3 = scmp.ne.s32.totalorder %s1225_s16, %s1221_s15  ;;  %p1513_p4 = scmp.eq.s32.totalorder %s1294_s19, 0 }
   0xc   : > { %s1310_s24 = scalar_select %p27_p1, %s1229_s17, %s29_s22  }
   0xd   : > { %p1312_p5 = por %p37_p2, %p36_p0  ;;  %p1318_p6 = por %p1513_p4, %p42_p3 }
   0xe   : > { %p129_p7 = scmp.eq.s32.totalorder %s1294_s19, 1  ;;  %p135_p8 = scmp.eq.s32.totalorder %s747_s20, 1 }
   0xf   : > { %s1516_s25 = scalar_select %p1312_p5, 1, 0 }
  0x10   : > { %s1517_s26 = scalar_select %p1318_p6, 1, 0 }
  0x11   : > { %p748_p9 = scmp.ge.s32.totalorder %s1233_s18, 1  ;;  %p142_p10 = scmp.lt.s32.totalorder %s1233_s18, 3 }
  0x12   : > { %p1325_p11 = por %p129_p7, %p36_p0  ;;  %p1329_p12 = por %p135_p8, %p42_p3 }
  0x13   : > { %p1333_p13 = pnand %p748_p9, %p142_p10  ;;  %s1235_s30 = smov [#allocation6]  }
  0x14   : > { %s1518_s27 = scalar_select %p1325_p11, 1, 0 }
  0x15   : > { %s1519_s28 = scalar_select %p1329_p12, 1, 0 }
  0x16   : > { %s1520_s29 = scalar_select %p1333_p13, 1, 0 }
  0x17   : > { %p1056_p1 = pneg %p1333_p13  ;;  %s154_s5 = sshll.u32 %s1235_s30, 4  ;;  %s155_s5 = int_to_ptr.vmem [resolvable:$true] %s154_s5 }
  0x18   : > { %s171_s9 = sshll.u32 %s1511_s3, 4  ;;  %s1116_s12 = scalar_lea.hbm %s1509_s1, 6144  ;;  %s1348_s9 = int_to_ptr.vmem [resolvable:$true] %s171_s9 }
  0x19   : > { %p1341_p2 = pnand %p1056_p1, %p1513_p4  ;;  %p1117_p0 = scmp.ne.s32.totalorder %s1509_s1, %s1116_s12 }
  0x1a   : > { %p1123_p9 = scmp.lt.u32.totalorder %s1116_s12, %s1509_s1 }
  0x1b   : > { %p1118_p3 = pneg %p1341_p2 }
  0x1d   : > { %p1119_p7 = pnand %p1118_p3, %p1117_p0 }
  0x1f   : > { %p1120_p8 = pneg %p1119_p7 }
  0x21   : > { %p1125_p10 = pnand %p1123_p9, %p1120_p8 }
  0x23   : > { %1128 = shalt.err (!%p1125_p10)
}
  0x24   : > { %s1129_s23 = scalar_lea.vmem %s155_s5, 6144  ;;  %p1137_p11 = scmp.lt.s32.totalorder %s155_s5, %s155_s5 }
  0x25   : > { %p1130_p1 = scmp.ne.s32.totalorder %s155_s5, %s1129_s23  ;;  %p1138_p6 = scmp.lt.s32.totalorder %s1129_s23, %s1129_s23 }
  0x27   : > { %p1132_p4 = pnand %p1130_p1, %p1118_p3  ;;  %p1139_p13 = por %p1138_p6, %p1137_p11 }
  0x29   : > { %p1133_p12 = pneg %p1132_p4 }
  0x2b   : > { %p1140_p5 = pnand %p1139_p13, %p1133_p12 }
  0x2d   : > { %1143 = shalt.err (!%p1140_p5)
}
  0x2e   : > { %s1236_s30 = smov 128   ;;  %s1237_s7 = smov 8  }
  0x2f   : > { %1059 = dma.hbm_to_vmem [thread:$0]  (!%p1341_p2), %s1509_s1, 6144, %s155_s5, [#allocation7], %s1236_s30, %s1236_s30, %s1237_s7  }
  0x30   : > { %s1144_s11 = scalar_lea.vmem %s1348_s9, 16  ;;  %p1152_p5 = scmp.lt.s32.totalorder %s1348_s9, %s1348_s9 }
  0x31   : > { %p1145_p0 = scmp.ne.s32.totalorder %s1348_s9, %s1144_s11  ;;  %p1153_p11 = scmp.lt.s32.totalorder %s1144_s11, %s1144_s11 }
  0x33   : > { %p1147_p4 = pnand %p1145_p0, %p1118_p3  ;;  %p1154_p12 = por %p1153_p11, %p1152_p5 }
  0x35   : > { %p1148_p6 = pneg %p1147_p4 }
  0x37   : > { %p1155_p13 = pnand %p1154_p12, %p1148_p6 }
  0x39   : > { %1158 = shalt.err (!%p1155_p13)
}
  0x3a   : > { %s1238_s12 = smov [#allocation8]   ;;  %p751_p7 = scmp.ge.s32.totalorder %s1233_s18, 2 }
  0x3b   : > { %1062 = dma.vmem_to_smem (!%p1341_p2), %s1348_s9, 16, %s1238_s12, [#allocation5]  }
  0x3c   : > { %178 = sbr.rel (%p751_p7) target bundleno = 102 (0x66), region = 28  ;;  %p1522_p8 = scmp.ne.s32.totalorder (!%p751_p7), %s1516_s25, 0 }
  0x43   : > { %181 = sbr.rel (!%p1522_p8) target bundleno = 102 (0x66), region = 32  ;;  %s182_s5 = sand.u32 (%p1522_p8), 1, %s1229_s17  }
  0x44   : > { %s753_s13 = sshll.u32 (%p1522_p8), %s1233_s18, 1  ;;  %s752_s14 = sshll.u32 (%p1522_p8), %s182_s5, 4 }
  0x45   : > { %s188_s20 = ssub.s32 (%p1522_p8), 3, %s753_s13  ;;  %s1392_s9 = scalar_lea.sflag (%p1522_p8), [#allocation3], %s182_s5 }
  0x46   : > { %p189_p3 = scmp.lt.s32.totalorder (%p1522_p8), %s188_s20, 2  ;;  %s186_s23 = scalar_lea.vmem (%p1522_p8), [#allocation2], %s752_s14 }
  0x4a   : > { %s1536_s20 = smov (!%p189_p3, %s188_s20), 2 }
  0x4b   : > { %s1389_s22 = sshll.u32 %s1536_s20, 7 }
  0x4c   : > { %s193_s6 = ssub.s32 256, %s1389_s22 }
  0x4d   : > { %194 = vsyncadd %s1392_s9, %s193_s6  ;;  %p755_p2 = scmp.ne.s32.totalorder %s1389_s22, 0  ;;  %s788_s25 = sshll.u32 %s1233_s18, 8 }
  0x4e   : > { %s1400_s8 = scalar_lea.hbm %s1508_s0, %s788_s25  ;;  %s199_s10 = sshll.u32 %s186_s23, 4  ;;  %s1402_s10 = int_to_ptr.vmem [resolvable:$true] %s199_s10 }
  0x4f   : > { %s1159_s11 = scalar_lea.hbm %s1400_s8, %s1389_s22  ;;  %s1163_s13 = scalar_lea.hbm %s1508_s0, 384 }
  0x50   : > { %p1160_p9 = scmp.ne.s32.totalorder %s1400_s8, %s1159_s11  ;;  %p1164_p0 = scmp.lt.u32.totalorder %s1400_s8, %s1508_s0 }
  0x51   : > { %p1165_p4 = scmp.lt.u32.totalorder %s1163_s13, %s1159_s11  ;;  %p1167_p5 = scmp.lt.u32.totalorder %s1159_s11, %s1400_s8 }
  0x52   : > { %p1161_p10 = pnand %p1160_p9, %p755_p2 }
  0x53   : > { %p1166_p6 = por %p1165_p4, %p1164_p0 }
  0x54   : > { %p1162_p1 = pneg %p1161_p10 }
  0x55   : > { %p1168_p11 = por %p1167_p5, %p1166_p6 }
  0x57   : > { %p1169_p12 = pnand %p1168_p11, %p1162_p1 }
  0x59   : > { %1172 = shalt.err (!%p1169_p12)
}
  0x5a   : > { %s1173_s6 = scalar_lea.vmem %s1402_s10, %s1389_s22  ;;  %s1239_s23 = smov [#allocation2]  }
  0x5b   : > { %p1174_p13 = scmp.ne.s32.totalorder %s1402_s10, %s1173_s6  ;;  %s1177_s25 = sshll.u32 %s1239_s23, 4  ;;  %s1178_s25 = int_to_ptr.vmem [resolvable:$false] %s1177_s25 }
  0x5c   : > { %s1179_s30 = scalar_lea.vmem %s1178_s25, 512  ;;  %p1180_p9 = scmp.lt.s32.totalorder %s1402_s10, %s1178_s25 }
  0x5d   : > { %p1175_p8 = pnand %p1174_p13, %p755_p2  ;;  %p1181_p10 = scmp.lt.s32.totalorder %s1179_s30, %s1173_s6 }
  0x5f   : > { %p1176_p3 = pneg %p1175_p8  ;;  %p1182_p0 = por %p1181_p10, %p1180_p9 }
  0x61   : > { %p1183_p4 = pnand %p1182_p0, %p1176_p3 }
  0x63   : > { %1186 = shalt.err (!%p1183_p4)
}
  0x64   : > { %s1240_s7 = smov 128   ;;  %s1241_s11 = smov 8  }
  0x65   : > { %205 = dma.hbm_to_vmem [thread:$0]  (%p755_p2), %s1400_s8, %s1389_s22, %s1402_s10, %s1392_s9, %s1240_s7, %s1240_s7, %s1241_s11  }
  0x66 PF: > { %p1523_p1 = scmp.ne.s32.totalorder %s1520_s29, 0 }
  0x67   : > { %s1432_s12 = sand.u32 (!%p1523_p1), 1, %s1225_s16   ;;  %p1524_p6 = scmp.ne.s32.totalorder (!%p1523_p1), %s1517_s26, 0 }
  0x68   : > { %211 = sbr.rel (%p1523_p1) target bundleno = 831 (0x33f), region = 36  ;;  %s760_s5 = sshll.u32 (!%p1523_p1), %s1432_s12, 4 }
  0x69   : > { %s214_s13 = scalar_lea.sflag (!%p1523_p1), [#allocation3], %s1432_s12  ;;  %s1436_s14 = scalar_lea.vmem (!%p1523_p1), [#allocation2], %s760_s5 }
  0x6f   : > { %1204 = dma.done.wait (%p1524_p6), %s214_s13, 256  }
  0x70   : > { %1206 = vsyncadd (%p1524_p6), %s214_s13, 4294967040  ;;  %p1525_p2 = scmp.eq.s32.totalorder %s1294_s19, 0 }
  0x72   : > { %1208 = dma.done.wait (%p1525_p2), [#allocation7], 6144   ;;  %p1526_p5 = pmov %p1525_p2 }
  0x73   : > { %p1527_p11 = pmov %p1525_p2 }
  0x74   : > { %1210 = vsyncadd (%p1526_p5), [#allocation7], 4294961152 }
  0x75   : > { %1212 = dma.done.wait (%p1527_p11), [#allocation5], 16   ;;  %p1528_p12 = pmov %p1525_p2 }
  0x77   : > { %1214 = vsyncadd (%p1528_p12), [#allocation5], 4294967280 }
  0x78   : > { %230 = sfence }
  0x79   : > { %v263_v0 = vld [vmem:[#allocation6] sm:$0xff]  ;;  %v264_v1 = vld [vmem:[#allocation6 + $0x8] sm:$0xff]  ;;  %v265_v2 = vld [vmem:[#allocation6 + $0x10] sm:$0xff]  ;;  %s363_s26 = sld [smem:[#allocation8]]  ;;  %s1045_s29 = smul.u32 96, %s1432_s12 }
  0x7a   : > { %v949_v3 = vpack.c.bf16 %v264_v1, %v263_v0  ;;  %v266_v4 = vld [vmem:[#allocation6 + $0x18] sm:$0xff]  ;;  %v267_v6 = vld [vmem:[#allocation6 + $0x20] sm:$0xff]  ;;  %v268_v7 = vld [vmem:[#allocation6 + $0x28] sm:$0xff]  ;;  %s770_s10 = sld [smem:[#allocation8 + $0x1]]  ;;  %s777_s23 = sld [smem:[#allocation8 + $0x2]] }
  0x7b   : > { %v953_v5 = vpack.c.bf16 %v266_v4, %v265_v2  ;;  %v957_v8 = vpack.c.bf16 %v268_v7, %v267_v6  ;;  %v269_v9 = vld [vmem:[#allocation6 + $0x30] sm:$0xff]  ;;  %v270_v10 = vld [vmem:[#allocation6 + $0x38] sm:$0xff]  ;;  %v375_v12 = vld [vmem:[#allocation6 + $0x80] sm:$0xff]  ;;  %s1456_s8 = scalar_lea.vmem [#allocation9], %s1045_s29  ;;  %s603_s7 = scalar_lea.sflag [#allocation4], %s1432_s12 }
  0x7c   : > { %950 = vmatprep.subr.bf16.mxu0 %v949_v3  ;;  %v261_v11 = vld [vmem:[%s1436_s14] sm:$0xff]  ;;  %v376_v13 = vld [vmem:[#allocation6 + $0x88] sm:$0xff]  ;;  %v378_v16 = vld [vmem:[#allocation6 + $0x98] sm:$0xff]  ;;  %v961_v20 = vpack.c.bf16 %v270_v10, %v269_v9  ;;  %p1529_p13 = scmp.ne.s32.totalorder %s1518_s27, 0 }
  0x7d   : > { %952 = vmatpush3.bf16.msra.mxu0 %v949_v3  ;;  %876 = vmatprep.mubr.f32.mxu0 %v261_v11  ;;  %v377_v14 = vld [vmem:[#allocation6 + $0x90] sm:$0xff]  ;;  %v981_v15 = vpack.c.bf16 %v376_v13, %v375_v12  ;;  %v379_v18 = vld [vmem:[#allocation6 + $0xa0] sm:$0xff]  ;;  %v380_v19 = vld [vmem:[#allocation6 + $0xa8] sm:$0xff] }
  0x7e   : > { %954 = vmatprep.subr.bf16.mxu0 %v953_v5  ;;  %v985_v17 = vpack.c.bf16 %v378_v16, %v377_v14  ;;  %v271_v21 = vld [vmem:[#allocation6 + $0x40] sm:$0xff]  ;;  %v272_v22 = vld [vmem:[#allocation6 + $0x48] sm:$0xff]  ;;  %v989_v23 = vpack.c.bf16 %v380_v19, %v379_v18  ;;  %v381_v24 = vld [vmem:[#allocation6 + $0xb0] sm:$0xff] }
  0x7f   : > { %982 = vmatprep.subr.bf16.mxu1 %v981_v15  ;;  %v382_v25 = vld [vmem:[#allocation6 + $0xb8] sm:$0xff]  ;;  %v965_v26 = vpack.c.bf16 %v272_v22, %v271_v21  ;;  %v273_v27 = vld [vmem:[#allocation6 + $0x50] sm:$0xff]  ;;  %v383_v30 = vld [vmem:[#allocation6 + $0xc0] sm:$0xff]  ;;  %v366_v6 = vstv %s363_s26 }
  0x80   : > { %984 = vmatpush3.bf16.msra.mxu1 %v981_v15  ;;  %v274_v28 = vld [vmem:[#allocation6 + $0x58] sm:$0xff]  ;;  %v993_v29 = vpack.c.bf16 %v382_v25, %v381_v24  ;;  %v384_v31 = vld [vmem:[#allocation6 + $0xc8] sm:$0xff]  ;;  %v275_v33 = vld [vmem:[#allocation6 + $0x60] sm:$0xff]  ;;  %v480_v22 = vstv %s770_s10 }
  0x81   : > { %956 = vmatpush3.bf16.msra.mxu0 %v953_v5  ;;  %986 = vmatprep.subr.bf16.mxu1 %v985_v17  ;;  %v969_v32 = vpack.c.bf16 %v274_v28, %v273_v27  ;;  %v276_v34 = vld [vmem:[#allocation6 + $0x68] sm:$0xff]  ;;  %v997_v35 = vpack.c.bf16 %v384_v31, %v383_v30  ;;  %v385_v36 = vld [vmem:[#allocation6 + $0xd0] sm:$0xff]  ;;  %v386_v37 = vld [vmem:[#allocation6 + $0xd8] sm:$0xff] }
  0x82   : > { %958 = vmatprep.subr.bf16.mxu0 %v957_v8  ;;  %v973_v38 = vpack.c.bf16 %v276_v34, %v275_v33  ;;  %v277_v39 = vld [vmem:[#allocation6 + $0x70] sm:$0xff]  ;;  %v278_v40 = vld [vmem:[#allocation6 + $0x78] sm:$0xff]  ;;  %v1001_v41 = vpack.c.bf16 %v386_v37, %v385_v36  ;;  %v387_v44 = vld [vmem:[#allocation6 + $0xe0] sm:$0xff] }
  0x83   : > { %v977_v42 = vpack.c.bf16 %v278_v40, %v277_v39  ;;  %v262_v43 = vld [vmem:[%s1436_s14 + $0x8] sm:$0xff]  ;;  %v389_v47 = vld [vmem:[#allocation6 + $0xf0] sm:$0xff]  ;;  %v489_v50 = vld [vmem:[#allocation6 + $0x100] sm:$0xff] }
  0x84   : > { %988 = vmatpush3.bf16.msra.mxu1 %v985_v17  ;;  %v388_v45 = vld [vmem:[#allocation6 + $0xe8] sm:$0xff]  ;;  %v390_v48 = vld [vmem:[#allocation6 + $0xf8] sm:$0xff]  ;;  %v491_v52 = vld [vmem:[#allocation6 + $0x110] sm:$0xff] }
  0x85   : > { %960 = vmatpush3.bf16.msra.mxu0 %v957_v8  ;;  %990 = vmatprep.subr.bf16.mxu1 %v989_v23  ;;  %v1005_v46 = vpack.c.bf16 %v388_v45, %v387_v44  ;;  %v1009_v49 = vpack.c.bf16 %v390_v48, %v389_v47  ;;  %v490_v51 = vld [vmem:[#allocation6 + $0x108] sm:$0xff]  ;;  %v492_v54 = vld [vmem:[#allocation6 + $0x118] sm:$0xff]  ;;  %v493_v56 = vld [vmem:[#allocation6 + $0x120] sm:$0xff] }
  0x86   : > { %962 = vmatprep.subr.bf16.mxu0 %v961_v20  ;;  %v1013_v53 = vpack.c.bf16 %v490_v51, %v489_v50  ;;  %v1017_v55 = vpack.c.bf16 %v492_v54, %v491_v52  ;;  %v494_v57 = vld [vmem:[#allocation6 + $0x128] sm:$0xff]  ;;  %v495_v59 = vld [vmem:[#allocation6 + $0x130] sm:$0xff]  ;;  %v496_v60 = vld [vmem:[#allocation6 + $0x138] sm:$0xff] }
  0x87   : > { %v1021_v58 = vpack.c.bf16 %v494_v57, %v493_v56  ;;  %v1025_v61 = vpack.c.bf16 %v496_v60, %v495_v59  ;;  %v497_v62 = vld [vmem:[#allocation6 + $0x140] sm:$0xff]  ;;  %v498_v63 = vld [vmem:[#allocation6 + $0x148] sm:$0xff]  ;;  %v499_v1 = vld [vmem:[#allocation6 + $0x150] sm:$0xff] }
  0x88   : > { %992 = vmatpush3.bf16.msra.mxu1 %v989_v23  ;;  %v1029_v0 = vpack.c.bf16 %v498_v63, %v497_v62  ;;  %v500_v2 = vld [vmem:[#allocation6 + $0x158] sm:$0xff]  ;;  %v763_v4 = vld [vmem:[%s1510_s2] ss:$0 sm:$0xff]  ;;  %v502_v15 = vld [vmem:[#allocation6 + $0x168] sm:$0xff] }
  0x89   : > { %964 = vmatpush3.bf16.msra.mxu0 %v961_v20  ;;  %994 = vmatprep.subr.bf16.mxu1 %v993_v29  ;;  %v1033_v3 = vpack.c.bf16 %v500_v2, %v499_v1  ;;  %v501_v14 = vld [vmem:[#allocation6 + $0x160] sm:$0xff]  ;;  %v503_v17 = vld [vmem:[#allocation6 + $0x170] sm:$0xff]  ;;  %v504_v18 = vld [vmem:[#allocation6 + $0x178] sm:$0xff] }
  0x8a   : > { %966 = vmatprep.subr.bf16.mxu0 %v965_v26  ;;  %v1037_v16 = vpack.c.bf16 %v502_v15, %v501_v14  ;;  %v1041_v19 = vpack.c.bf16 %v504_v18, %v503_v17  ;;  %v767_v20 = vld [vmem:[%s1510_s2 + $0x1] ss:$0 sm:$0xff]  ;;  %v774_v30 = vld [vmem:[%s1510_s2 + $0x2] ss:$0 sm:$0xff] }
  0x8c   : > { %996 = vmatpush3.bf16.msra.mxu1 %v993_v29 }
  0x8d   : > { %968 = vmatpush3.bf16.msra.mxu0 %v965_v26  ;;  %998 = vmatprep.subr.bf16.mxu1 %v997_v35 }
  0x8e   : > { %970 = vmatprep.subr.bf16.mxu0 %v969_v32 }
  0x90   : > { %1000 = vmatpush3.bf16.msra.mxu1 %v997_v35 }
  0x91   : > { %972 = vmatpush3.bf16.msra.mxu0 %v969_v32  ;;  %1002 = vmatprep.subr.bf16.mxu1 %v1001_v41  ;;  %v594_v32 = vstv %s777_s23 }
  0x92   : > { %974 = vmatprep.subr.bf16.mxu0 %v973_v38 }
  0x94   : > { %1004 = vmatpush3.bf16.msra.mxu1 %v1001_v41 }
  0x95   : > { %976 = vmatpush3.bf16.msra.mxu0 %v973_v38  ;;  %1006 = vmatprep.subr.bf16.mxu1 %v1005_v46 }
  0x96   : > { %978 = vmatprep.subr.bf16.mxu0 %v977_v42 }
  0x98   : > { %1008 = vmatpush3.bf16.msra.mxu1 %v1005_v46 }
  0x99   : > { %980 = vmatpush3.bf16.msra.mxu0 %v977_v42  ;;  %1010 = vmatprep.subr.bf16.mxu1 %v1009_v49 }
  0x9a   : > { %1014 = vmatprep.subr.bf16.mxu0 %v1013_v53 }
  0x9c   : > { %877 = vmatmul.mubr.f32.vlgmr.msra.gmra.mrb[0].mxu0 %v262_v43  ;;  %1012 = vmatpush3.bf16.msra.mxu1 %v1009_v49 }
  0x9d   : > { %1016 = vmatpush3.bf16.msra.mxu0 %v1013_v53 }
  0x9e   : > { %1018 = vmatprep.subr.bf16.mxu0 %v1017_v55 }
  0xa1   : > { %1020 = vmatpush3.bf16.msra.mxu0 %v1017_v55 }
  0xa2   : > { %1022 = vmatprep.subr.bf16.mxu0 %v1021_v58 }
  0xa5   : > { %1024 = vmatpush3.bf16.msra.mxu0 %v1021_v58 }
  0xa6   : > { %1026 = vmatprep.subr.bf16.mxu0 %v1025_v61 }
  0xa9   : > { %1028 = vmatpush3.bf16.msra.mxu0 %v1025_v61 }
  0xaa   : > { %1030 = vmatprep.subr.bf16.mxu0 %v1029_v0 }
  0xad   : > { %1032 = vmatpush3.bf16.msra.mxu0 %v1029_v0 }
  0xae   : > { %1034 = vmatprep.subr.bf16.mxu0 %v1033_v3 }
  0xb1   : > { %1036 = vmatpush3.bf16.msra.mxu0 %v1033_v3 }
  0xb2   : > { %1038 = vmatprep.subr.bf16.mxu0 %v1037_v16 }
  0xb5   : > { %1040 = vmatpush3.bf16.msra.mxu0 %v1037_v16 }
  0xb6   : > { %1042 = vmatprep.subr.bf16.mxu0 %v1041_v19 }
  0xb9   : > { %1044 = vmatpush3.bf16.msra.mxu0 %v1041_v19 }
 0x16f   : > { %v878_v5 = vpop.f32.mrb[0].mxu0 }
 0x170   : > { %v358_v7 = vadd.f32 %v878_v5, %v763_v4  ;;  %v352_v8 = vpop.f32.mrb[1].mxu0 }
 0x171   : > { %v353_v9 = vadd.f32 %v763_v4, %v352_v8 }
 0x172   : > { %362 = vst [vmem:[%s1456_s8 + $0x8] sm:$0xff] %v358_v7  ;;  %vm365_vm0 = vcmp.gt.f32.partialorder %v358_v7, 0.0  ;;  %v368_v10 = vmul.f32 %v366_v6, %v358_v7 }
 0x173   : > { %361 = vst [vmem:[%s1456_s8] sm:$0xff] %v353_v9  ;;  %vm364_vm1 = vcmp.gt.f32.partialorder %v353_v9, 0.0  ;;  %v367_v11 = vmul.f32 %v366_v6, %v353_v9 }
 0x174   : > { %v370_v12 = vsel %vm365_vm0, %v358_v7, %v368_v10 }
 0x175   : > { %v369_v13 = vsel %vm364_vm1, %v353_v9, %v367_v11  ;;  %765 = vst [vmem:[%s1456_s8 + $0x18] sm:$0xff] %v370_v12 }
 0x176   : > { %764 = vst [vmem:[%s1456_s8 + $0x10] sm:$0xff] %v369_v13  ;;  %911 = vmatprep.mubr.f32.mxu1 %v369_v13 }
 0x177   : > { %912 = vmatmul.mubr.f32.vlgmr.msra.gmra.mrb[0].mxu1 %v370_v12 }
 0x24a   : > { %v913_v21 = vpop.f32.mrb[0].mxu1 }
 0x24b   : > { %v471_v23 = vadd.f32 %v913_v21, %v767_v20  ;;  %v465_v24 = vpop.f32.mrb[1].mxu1 }
 0x24c   : > { %v466_v25 = vadd.f32 %v767_v20, %v465_v24 }
 0x24d   : > { %769 = vst [vmem:[%s1456_s8 + $0x28] sm:$0xff] %v471_v23  ;;  %vm479_vm2 = vcmp.gt.f32.partialorder %v471_v23, 0.0  ;;  %v482_v26 = vmul.f32 %v480_v22, %v471_v23 }
 0x24e   : > { %768 = vst [vmem:[%s1456_s8 + $0x20] sm:$0xff] %v466_v25  ;;  %vm478_vm3 = vcmp.gt.f32.partialorder %v466_v25, 0.0  ;;  %v481_v27 = vmul.f32 %v480_v22, %v466_v25 }
 0x24f   : > { %v484_v28 = vsel %vm479_vm2, %v471_v23, %v482_v26 }
 0x250   : > { %v483_v29 = vsel %vm478_vm3, %v466_v25, %v481_v27  ;;  %772 = vst [vmem:[%s1456_s8 + $0x38] sm:$0xff] %v484_v28 }
 0x251   : > { %771 = vst [vmem:[%s1456_s8 + $0x30] sm:$0xff] %v483_v29  ;;  %946 = vmatprep.mubr.f32.mxu0 %v483_v29 }
 0x252   : > { %947 = vmatmul.mubr.f32.vlgmr.msra.gmra.mrb[2].mxu0 %v484_v28 }
 0x325   : > { %v948_v31 = vpop.f32.mrb[2].mxu0 }
 0x326   : > { %v585_v33 = vadd.f32 %v948_v31, %v774_v30  ;;  %v579_v34 = vpop.f32.mrb[3].mxu0  ;;  %609 = sbr.rel (!%p1529_p13) target bundleno = 831 (0x33f), region = 52 }
 0x327   : > { %v580_v35 = vadd.f32 %v774_v30, %v579_v34 }
 0x328   : > { %776 = vst [vmem:[%s1456_s8 + $0x48] sm:$0xff] %v585_v33  ;;  %vm593_vm4 = vcmp.gt.f32.partialorder %v585_v33, 0.0  ;;  %v596_v36 = vmul.f32 %v594_v32, %v585_v33 }
 0x329   : > { %775 = vst [vmem:[%s1456_s8 + $0x40] sm:$0xff] %v580_v35  ;;  %vm592_vm5 = vcmp.gt.f32.partialorder %v580_v35, 0.0  ;;  %v595_v37 = vmul.f32 %v594_v32, %v580_v35 }
 0x32a   : > { %v598_v38 = vsel %vm593_vm4, %v585_v33, %v596_v36 }
 0x32b   : > { %779 = vst [vmem:[%s1456_s8 + $0x58] sm:$0xff] %v598_v38  ;;  %v597_v39 = vsel %vm592_vm5, %v580_v35, %v595_v37 }
 0x32c   : > { %778 = vst [vmem:[%s1456_s8 + $0x50] sm:$0xff] %v597_v39 }
 0x32d   : > { %s780_s11 = sshll.u32 %s1294_s19, 1 }
 0x32e   : > { %s611_s5 = ssub.s32 3, %s780_s11 }
 0x32f   : > { %p612_p8 = scmp.lt.s32.totalorder %s611_s5, 2 }
 0x331   : > { %s1538_s5 = smov (!%p612_p8, %s611_s5), 2 }
 0x332   : > { %s614_s13 = smul.u32 768, %s1538_s5 }
 0x334   : > { %s616_s14 = ssub.s32 1536, %s614_s13 }
 0x335   : > { %617 = vsyncadd %s603_s7, %s616_s14  ;;  %p781_p3 = scmp.ne.s32.totalorder %s614_s13, 0  ;;  %s789_s26 = sshll.u32 %s1294_s19, 8 }
 0x336   : > { %s620_s27 = scalar_lea.hbm %s1512_s4, %s789_s26  ;;  %s639_s9 = sshll.u32 %s1456_s8, 4  ;;  %s640_s9 = int_to_ptr.vmem [resolvable:$true] %s639_s9 }
 0x337   : > { %s1242_s10 = smov 256   ;;  %s1243_s20 = smov 384  }
 0x338   : > { %646 = sst [smem:[#allocation11]] %s1242_s10  ;;  %s1244_s6 = smov 128  }
 0x339   : > { %648 = sst [smem:[#allocation11 + $0x1]] %s1243_s20  ;;  %s1245_s23 = smov 8  }
 0x33a   : > { %650 = sst [smem:[#allocation11 + $0x2]] %s1538_s5  ;;  %s1246_s25 = smov [#allocation10]  }
 0x33b   : > { %652 = sst [smem:[#allocation11 + $0x3]] %s1244_s6  ;;  %s1247_s30 = smov 0  }
 0x33c   : > { %654 = sst [smem:[#allocation11 + $0x4]] %s1244_s6 }
 0x33d   : > { %656 = sst [smem:[#allocation11 + $0x5]] %s1245_s23 }
 0x33e   : > { %658 = dma.general (%p781_p3), %s640_s9, %s614_s13, %s620_s27, %s603_s7, %s1246_s25, [#allocation11], %s1247_s30, 0  }
 0x33f PF: > { %s667_s19 = sand.u32 1, %s1221_s15   ;;  %p1530_p9 = scmp.ne.s32.totalorder %s1519_s28, 0 }
 0x340   : > { %s668_s8 = scalar_lea.sflag [#allocation4], %s667_s19 }
 0x341   : > { %p1064_p10 = pnand %p751_p7, %p1530_p9 }
 0x343   : > { %1216 = dma.done.wait (!%p1064_p10), %s668_s8, 1536  }
 0x344   : > { %1218 = vsyncadd (!%p1064_p10), %s668_s8, 4294965760  ;;  %p19_p0 = scmp.ge.s32.totalorder %s1298_s21, 4   ;;  %s1531_s15 = smov %s1225_s16 }
 0x345   : > { %s1532_s16 = smov %s1229_s17  ;;  %s1533_s17 = smov %s1310_s24 }
 0x346   : > { %s1534_s18 = smov %s1298_s21  ;;  %21 = sbr.rel (!%p19_p0) target bundleno = 7 (0x7), region = 104 }
 0x34d   :  { %673 = vsyncpa [#allocation3], 1 }
 0x34e   :  { %675 = vsyncpa [#allocation3 + $0x1], 1 }
 0x34f   :  { %676 = vsyncpa [#allocation7], 1 }
 0x350   :  { %677 = vsyncpa [#allocation4], 1 }
 0x351   :  { %679 = vsyncpa [#allocation4 + $0x1], 1 }
 0x352   :  { %680 = vsyncpa [#allocation5], 1 }
 0x353   :  { %682 = vsyncpa [#allocation5 + $0x1], 1 }

</bundles_post_ra>
